<compile_context>
chip_gen: v5e
topology: v5e:2x2
jax: 0.10.0
libtpu: 0.0.40
codegen_flags: <defaults>
</compile_context>

<pallas_src>
import jax
import jax.numpy as jnp
from jax.experimental import pallas as pl
from jax.experimental.pallas import tpu as pltpu

N_EMBD = 32
UPFACTOR = 4
HIDDEN = UPFACTOR * N_EMBD          # 128
TOK_PER_ROW = 128 // N_EMBD         # 4 tokens packed per 128-lane row
ROW_GRANULE = 8 * TOK_PER_ROW       # 32 tokens = one (8,128) f32 vreg
LN_EPS = 1e-5


def _round_up(n, m):
    return ((n + m - 1) // m) * m


def _layer_norm(v, gamma, beta):
    """Plain f32 LayerNorm over the last dim (used by the pure-JAX reference)."""
    mu = jnp.mean(v, axis=-1, keepdims=True)
    var = jnp.mean((v - mu) ** 2, axis=-1, keepdims=True)
    return (v - mu) * jax.lax.rsqrt(var + LN_EPS) * gamma + beta


# ----------------------------------------------------------------------------
# Kernel: operates on the packed (rows/4, 128) layout, 4 tokens per lane row.
# ----------------------------------------------------------------------------
def block_kernel(x_ref,
                 seg_ref,                 # (128,128) bf16 block-diag averaging matrix
                 g1_ref, b1_ref,          # LN1 affine, block_lr folded, token-tiled
                 g2_ref, b2_ref,          # LN2 affine, token-tiled
                 wgl_ref, bgl_ref,        # folded+fused GLU weights, block-diag packed
                 wproj_ref, bproj_ref,    # block_lr * c_proj, block-diag packed
                 o_ref):
    seg = seg_ref[...]                                # bf16 (128, 128)
    x = x_ref[...].astype(jnp.float32)                # (tile_p, 128)

    def seg_mean(v):
        # Per-token (32-lane-segment) mean, broadcast back across the segment,
        # via the block-diagonal averaging matmul.  hi/lo bf16 split keeps the
        # result ~f32-exact (relative error ~2^-16) at 2 MXU passes.
        hi = v.astype(jnp.bfloat16)
        lo = (v - hi.astype(jnp.float32)).astype(jnp.bfloat16)
        return (jnp.dot(hi, seg, preferred_element_type=jnp.float32)
                + jnp.dot(lo, seg, preferred_element_type=jnp.float32))

    def layer_norm(v, gamma, beta):
        mu = seg_mean(v)
        vc = v - mu
        var = seg_mean(vc * vc)
        return vc * jax.lax.rsqrt(var + LN_EPS) * gamma + beta

    # --- seq-mixer branch (Identity): x = x + block_lr * LN1(x) ---
    # block_lr is pre-folded into gamma1/beta1 (f32, exact).
    x = x + layer_norm(x, g1_ref[...], b1_ref[...])

    # --- MLP branch: x = x + block_lr * c_proj(GLU(c_fc(LN2(x)))) ---
    y2 = layer_norm(x, g2_ref[...], b2_ref[...])
    # One fused matmul: columns [0:512) = 4 tokens' gate pre-act, [512:1024) = lins.
    gl = jnp.dot(y2.astype(jnp.bfloat16), wgl_ref[...],
                 preferred_element_type=jnp.float32) + bgl_ref[...]
    gate = jax.nn.sigmoid(gl[:, :TOK_PER_ROW * HIDDEN])   # vreg-aligned split at 512
    lin = gl[:, TOK_PER_ROW * HIDDEN:]
    g = (gate * lin).astype(jnp.bfloat16)                  # (tile_p, 512)
    m = jnp.dot(g, wproj_ref[...],
                preferred_element_type=jnp.float32) + bproj_ref[...]
    # dropout(p=0.0) in eval mode == identity

    o_ref[...] = (x + m).astype(o_ref.dtype)


# ----------------------------------------------------------------------------
# Wrapper-side (one-time) weight folding into the packed, block-diagonal layout.
# ----------------------------------------------------------------------------
def _prepare_kernel_params(params, block_lr):
    (g1, b1, g2, b2, wfc, bfc, wp1, wp2, wproj, bproj) = params
    lr = jnp.float32(block_lr)
    eye = jnp.eye(TOK_PER_ROW, dtype=jnp.float32)

    def tile_row(v):                                   # (1, C) -> (1, 4C)
        return jnp.tile(v.reshape(1, -1), (1, TOK_PER_ROW)).astype(jnp.float32)

    # Fold block_lr into the LN1 affine (seq-mixer branch) -- f32, exact.
    g1p, b1p = tile_row(lr * g1), tile_row(lr * b1)
    g2p, b2p = tile_row(g2), tile_row(b2)

    # Fold c_fc into the two GLU projections; build block-diagonal packed forms.
    wg = wfc @ wp1                                     # (C, H)
    wl = wfc @ wp2                                     # (C, H)
    cg = (bfc @ wp1).reshape(1, -1)                    # (1, H)
    cl = (bfc @ wp2).reshape(1, -1)                    # (1, H)
    wgl = jnp.concatenate([jnp.kron(eye, wg), jnp.kron(eye, wl)],
                          axis=1).astype(jnp.bfloat16)            # (4C, 8H) = (128,1024)
    bgl = jnp.concatenate([jnp.tile(cg, (1, TOK_PER_ROW)),
                           jnp.tile(cl, (1, TOK_PER_ROW))],
                          axis=1).astype(jnp.float32)             # (1, 1024)

    # Fold block_lr into the output projection (f32 fold, then bf16 cast;
    # bf16 relative precision is scale-invariant so small lr is safe).
    wprojp = jnp.kron(eye, lr * wproj).astype(jnp.bfloat16)       # (4H, 4C) = (512,128)
    bprojp = tile_row(lr * bproj)                                 # (1, 4C)

    # Block-diagonal per-token averaging matrix (1/32 is exact in bf16).
    seg = jnp.kron(eye, jnp.full((N_EMBD, N_EMBD), 1.0 / N_EMBD,
                                 jnp.float32)).astype(jnp.bfloat16)  # (128,128)

    return (seg, g1p, b1p, g2p, b2p, wgl, bgl, wprojp, bprojp)


def _vmem_capacity_bytes():
    try:
        return int(pltpu.get_tpu_info().vmem_capacity_bytes)
    except Exception:
        return 64 << 20          # conservative fallback (v7x per-core VMEM)


def block_forward(x, params, block_lr=1.0, tokens_per_tile=None):
    """x: (B, T, C). Returns (B, T, C)."""
    B, T, C = x.shape
    assert C == N_EMBD and 128 % C == 0
    rows = B * T

    vmem_cap = _vmem_capacity_bytes()
    if tokens_per_tile is None:
        # ~8192 tokens/tile on 128-MiB-VMEM parts (v5e/v6e), ~4096 on 64-MiB (v7x).
        tokens_per_tile = 8192 if vmem_cap >= (96 << 20) else 4096

    # --- pick tile / grid: tile divides the padded row count; prefer an even
    #     step count >= 2 so both v7x TensorCores get work. ---
    rows32 = _round_up(rows, ROW_GRANULE)
    packed_rows = rows32 // TOK_PER_ROW
    target_p = max(8, _round_up(tokens_per_tile, ROW_GRANULE) // TOK_PER_ROW)
    nsteps = pl.cdiv(packed_rows, target_p)
    if packed_rows >= 16:
        nsteps = max(nsteps, 2)
    if nsteps > 1 and nsteps % 2:
        nsteps += 1
    tile_p = _round_up(pl.cdiv(packed_rows, nsteps), 8)
    padded_p = tile_p * nsteps
    pad_tokens = padded_p * TOK_PER_ROW - rows

    # --- lane-dense packing: 4 tokens per 128-lane row (pure reshape). ---
    x2 = x.reshape(rows, C)
    if pad_tokens:
        x2 = jnp.pad(x2, ((0, pad_tokens), (0, 0)))
    xp = x2.reshape(padded_p, TOK_PER_ROW * C)          # (padded_p, 128)

    # Scoped-VMEM budget: dominant live temps are the (tile_p, 1024) f32 GLU
    # pre-activations + gate/lin (~16 KiB/packed-row) plus double-buffered
    # 128-lane I/O tiles and <1 MiB of resident weights.
    vmem_limit = tile_p * (24 << 10) + (12 << 20)
    vmem_limit = int(max(32 << 20, min(vmem_limit, int(0.75 * vmem_cap))))

    (seg, g1p, b1p, g2p, b2p, wgl, bgl, wprojp, bprojp) = \
        _prepare_kernel_params(params, block_lr)

    full = lambda shape: pl.BlockSpec(shape, lambda i: (0,) * len(shape))
    lane_w = TOK_PER_ROW * C                            # 128

    out = pl.pallas_call(
        block_kernel,
        out_shape=jax.ShapeDtypeStruct((padded_p, lane_w), x.dtype),
        grid_spec=pltpu.PrefetchScalarGridSpec(
            num_scalar_prefetch=0,
            grid=(nsteps,),
            in_specs=[
                pl.BlockSpec((tile_p, lane_w), lambda i: (i, 0)),   # packed x tile
                full((lane_w, lane_w)),                             # averaging matrix
                full((1, lane_w)), full((1, lane_w)),               # LN1 gamma/beta
                full((1, lane_w)), full((1, lane_w)),               # LN2 gamma/beta
                full((lane_w, 2 * TOK_PER_ROW * HIDDEN)),           # packed GLU W
                full((1, 2 * TOK_PER_ROW * HIDDEN)),                # packed GLU b
                full((TOK_PER_ROW * HIDDEN, lane_w)),               # packed c_proj W
                full((1, lane_w)),                                  # packed c_proj b
            ],
            out_specs=pl.BlockSpec((tile_p, lane_w), lambda i: (i, 0)),
        ),
        compiler_params=pltpu.CompilerParams(
            dimension_semantics=("parallel",),
            vmem_limit_bytes=vmem_limit),
    )(xp, seg, g1p, b1p, g2p, b2p, wgl, bgl, wprojp, bprojp)

    return out.reshape(padded_p * TOK_PER_ROW, C)[:rows].reshape(B, T, C)


# ----------------------------------------------------------------------------
# Params + pure-JAX reference (mirrors the original PyTorch module, f32).
# ----------------------------------------------------------------------------
def make_params(key):
    ks = jax.random.split(key, 6)
    scale = 0.02
    g1 = jnp.ones((1, N_EMBD), jnp.float32)
    b1 = jnp.zeros((1, N_EMBD), jnp.float32)
    g2 = jnp.ones((1, N_EMBD), jnp.float32)
    b2 = jnp.zeros((1, N_EMBD), jnp.float32)
    wfc = scale * jax.random.normal(ks[0], (N_EMBD, HIDDEN), jnp.float32)
    bfc = scale * jax.random.normal(ks[1], (1, HIDDEN), jnp.float32)
    wp1 = scale * jax.random.normal(ks[2], (HIDDEN, HIDDEN), jnp.float32)
    wp2 = scale * jax.random.normal(ks[3], (HIDDEN, HIDDEN), jnp.float32)
    wproj = scale * jax.random.normal(ks[4], (HIDDEN, N_EMBD), jnp.float32)
    bproj = scale * jax.random.normal(ks[5], (1, N_EMBD), jnp.float32)
    return (g1, b1, g2, b2, wfc, bfc, wp1, wp2, wproj, bproj)


def reference_forward(x, params, block_lr=1.0):
    (g1, b1, g2, b2, wfc, bfc, wp1, wp2, wproj, bproj) = params
    y1 = _layer_norm(x, g1, b1)
    x = x + block_lr * y1
    y2 = _layer_norm(x, g2, b2)
    h = y2 @ wfc + bfc
    g = jax.nn.sigmoid(h @ wp1) * (h @ wp2)
    m = g @ wproj + bproj
    return x + block_lr * m


if __name__ == "__main__":
    key = jax.random.PRNGKey(0)
    kx, kp = jax.random.split(key)
    B, T = 2, 8
    x = jax.random.normal(kx, (B, T, N_EMBD), jnp.float32)
    params = make_params(kp)

    out = block_forward(x, params, block_lr=1.0)
    out = jax.block_until_ready(out)

    ref = reference_forward(x, params, block_lr=1.0)
    assert out.shape == (B, T, N_EMBD)
    # bf16 MXU operands + weight folding shift rounding slightly vs. the f32
    # reference (LN stats use a hi/lo split and are ~f32-exact); measured error
    # is ~1e-4, tolerance kept comfortably above it.
    assert jnp.allclose(out, ref, atol=2e-3, rtol=2e-3), (
        float(jnp.max(jnp.abs(out - ref))))
    print("KERNEL_OK")
</pallas_src>

<mosaic_0001>
module attributes {stable_mosaic.version = 11 : i64} {
  func.func @block_kernel(%arg0: i32, %arg1: memref<8x128xf32, #tpu.memory_space<vmem>>, %arg2: memref<128x128xbf16, #tpu.memory_space<vmem>>, %arg3: memref<1x128xf32, #tpu.memory_space<vmem>>, %arg4: memref<1x128xf32, #tpu.memory_space<vmem>>, %arg5: memref<1x128xf32, #tpu.memory_space<vmem>>, %arg6: memref<1x128xf32, #tpu.memory_space<vmem>>, %arg7: memref<128x1024xbf16, #tpu.memory_space<vmem>>, %arg8: memref<1x1024xf32, #tpu.memory_space<vmem>>, %arg9: memref<512x128xbf16, #tpu.memory_space<vmem>>, %arg10: memref<1x128xf32, #tpu.memory_space<vmem>>, %arg11: memref<8x128xf32, #tpu.memory_space<vmem>>) attributes {dimension_semantics = [#tpu.dimension_semantics<parallel>], iteration_bounds = array<i64: 1>, scalar_prefetch = 0 : i64, scratch_operands = 0 : i64, tpu.core_type = #tpu.core_type<tc>, window_params = [{transform_indices = @transform_0, window_bounds = array<i64: 8, 128>}, {pipeline_mode = #tpu.pipeline_mode<synchronous>, transform_indices = @transform_1, window_bounds = array<i64: 128, 128>}, {pipeline_mode = #tpu.pipeline_mode<synchronous>, transform_indices = @transform_2, window_bounds = array<i64: 1, 128>}, {pipeline_mode = #tpu.pipeline_mode<synchronous>, transform_indices = @transform_3, window_bounds = array<i64: 1, 128>}, {pipeline_mode = #tpu.pipeline_mode<synchronous>, transform_indices = @transform_4, window_bounds = array<i64: 1, 128>}, {pipeline_mode = #tpu.pipeline_mode<synchronous>, transform_indices = @transform_5, window_bounds = array<i64: 1, 128>}, {pipeline_mode = #tpu.pipeline_mode<synchronous>, transform_indices = @transform_6, window_bounds = array<i64: 128, 1024>}, {pipeline_mode = #tpu.pipeline_mode<synchronous>, transform_indices = @transform_7, window_bounds = array<i64: 1, 1024>}, {pipeline_mode = #tpu.pipeline_mode<synchronous>, transform_indices = @transform_8, window_bounds = array<i64: 512, 128>}, {pipeline_mode = #tpu.pipeline_mode<synchronous>, transform_indices = @transform_9, window_bounds = array<i64: 1, 128>}, {transform_indices = @transform_10, window_bounds = array<i64: 8, 128>}]} {
    %c0 = arith.constant 0 : index
    %c0_0 = arith.constant 0 : index
    %0 = vector.load %arg2[%c0, %c0_0] : memref<128x128xbf16, #tpu.memory_space<vmem>>, vector<128x128xbf16>
    %c0_1 = arith.constant 0 : index
    %c0_2 = arith.constant 0 : index
    %1 = vector.load %arg1[%c0_1, %c0_2] : memref<8x128xf32, #tpu.memory_space<vmem>>, vector<8x128xf32>
    %c0_3 = arith.constant 0 : index
    %c0_4 = arith.constant 0 : index
    %2 = vector.load %arg3[%c0_3, %c0_4] : memref<1x128xf32, #tpu.memory_space<vmem>>, vector<1x128xf32>
    %c0_5 = arith.constant 0 : index
    %c0_6 = arith.constant 0 : index
    %3 = vector.load %arg4[%c0_5, %c0_6] : memref<1x128xf32, #tpu.memory_space<vmem>>, vector<1x128xf32>
    %4 = arith.truncf %1 : vector<8x128xf32> to vector<8x128xbf16>
    %5 = arith.extf %4 : vector<8x128xbf16> to vector<8x128xf32>
    %6 = arith.subf %1, %5 : vector<8x128xf32>
    %7 = arith.truncf %6 : vector<8x128xf32> to vector<8x128xbf16>
    %cst = arith.constant dense<0.000000e+00> : vector<8x128xf32>
    %8 = tpu.matmul %4, %0, %cst {dimension_numbers = #tpu.dot_dimension_numbers<[1], [0], [0], [1], [0, 0, 1, 1], [], []>} : vector<8x128xbf16>, vector<128x128xbf16>, vector<8x128xf32> -> vector<8x128xf32>
    %cst_7 = arith.constant dense<0.000000e+00> : vector<8x128xf32>
    %9 = tpu.matmul %7, %0, %cst_7 {dimension_numbers = #tpu.dot_dimension_numbers<[1], [0], [0], [1], [0, 0, 1, 1], [], []>} : vector<8x128xbf16>, vector<128x128xbf16>, vector<8x128xf32> -> vector<8x128xf32>
    %10 = arith.addf %8, %9 : vector<8x128xf32>
    %11 = arith.subf %1, %10 : vector<8x128xf32>
    %12 = arith.mulf %11, %11 : vector<8x128xf32>
    %13 = arith.truncf %12 : vector<8x128xf32> to vector<8x128xbf16>
    %14 = arith.extf %13 : vector<8x128xbf16> to vector<8x128xf32>
    %15 = arith.subf %12, %14 : vector<8x128xf32>
    %16 = arith.truncf %15 : vector<8x128xf32> to vector<8x128xbf16>
    %cst_8 = arith.constant dense<0.000000e+00> : vector<8x128xf32>
    %17 = tpu.matmul %13, %0, %cst_8 {dimension_numbers = #tpu.dot_dimension_numbers<[1], [0], [0], [1], [0, 0, 1, 1], [], []>} : vector<8x128xbf16>, vector<128x128xbf16>, vector<8x128xf32> -> vector<8x128xf32>
    %cst_9 = arith.constant dense<0.000000e+00> : vector<8x128xf32>
    %18 = tpu.matmul %16, %0, %cst_9 {dimension_numbers = #tpu.dot_dimension_numbers<[1], [0], [0], [1], [0, 0, 1, 1], [], []>} : vector<8x128xbf16>, vector<128x128xbf16>, vector<8x128xf32> -> vector<8x128xf32>
    %19 = arith.addf %17, %18 : vector<8x128xf32>
    %cst_10 = arith.constant 9.99999974E-6 : f32
    %20 = vector.broadcast %cst_10 : f32 to vector<8x128xf32>
    %21 = arith.addf %19, %20 : vector<8x128xf32>
    %22 = math.rsqrt %21 : vector<8x128xf32>
    %23 = arith.mulf %11, %22 : vector<8x128xf32>
    %24 = vector.broadcast %2 : vector<1x128xf32> to vector<8x128xf32>
    %25 = arith.mulf %23, %24 : vector<8x128xf32>
    %26 = vector.broadcast %3 : vector<1x128xf32> to vector<8x128xf32>
    %27 = arith.addf %25, %26 : vector<8x128xf32>
    %28 = arith.addf %1, %27 : vector<8x128xf32>
    %c0_11 = arith.constant 0 : index
    %c0_12 = arith.constant 0 : index
    %29 = vector.load %arg5[%c0_11, %c0_12] : memref<1x128xf32, #tpu.memory_space<vmem>>, vector<1x128xf32>
    %c0_13 = arith.constant 0 : index
    %c0_14 = arith.constant 0 : index
    %30 = vector.load %arg6[%c0_13, %c0_14] : memref<1x128xf32, #tpu.memory_space<vmem>>, vector<1x128xf32>
    %31 = arith.truncf %28 : vector<8x128xf32> to vector<8x128xbf16>
    %32 = arith.extf %31 : vector<8x128xbf16> to vector<8x128xf32>
    %33 = arith.subf %28, %32 : vector<8x128xf32>
    %34 = arith.truncf %33 : vector<8x128xf32> to vector<8x128xbf16>
    %cst_15 = arith.constant dense<0.000000e+00> : vector<8x128xf32>
    %35 = tpu.matmul %31, %0, %cst_15 {dimension_numbers = #tpu.dot_dimension_numbers<[1], [0], [0], [1], [0, 0, 1, 1], [], []>} : vector<8x128xbf16>, vector<128x128xbf16>, vector<8x128xf32> -> vector<8x128xf32>
    %cst_16 = arith.constant dense<0.000000e+00> : vector<8x128xf32>
    %36 = tpu.matmul %34, %0, %cst_16 {dimension_numbers = #tpu.dot_dimension_numbers<[1], [0], [0], [1], [0, 0, 1, 1], [], []>} : vector<8x128xbf16>, vector<128x128xbf16>, vector<8x128xf32> -> vector<8x128xf32>
    %37 = arith.addf %35, %36 : vector<8x128xf32>
    %38 = arith.subf %28, %37 : vector<8x128xf32>
    %39 = arith.mulf %38, %38 : vector<8x128xf32>
    %40 = arith.truncf %39 : vector<8x128xf32> to vector<8x128xbf16>
    %41 = arith.extf %40 : vector<8x128xbf16> to vector<8x128xf32>
    %42 = arith.subf %39, %41 : vector<8x128xf32>
    %43 = arith.truncf %42 : vector<8x128xf32> to vector<8x128xbf16>
    %cst_17 = arith.constant dense<0.000000e+00> : vector<8x128xf32>
    %44 = tpu.matmul %40, %0, %cst_17 {dimension_numbers = #tpu.dot_dimension_numbers<[1], [0], [0], [1], [0, 0, 1, 1], [], []>} : vector<8x128xbf16>, vector<128x128xbf16>, vector<8x128xf32> -> vector<8x128xf32>
    %cst_18 = arith.constant dense<0.000000e+00> : vector<8x128xf32>
    %45 = tpu.matmul %43, %0, %cst_18 {dimension_numbers = #tpu.dot_dimension_numbers<[1], [0], [0], [1], [0, 0, 1, 1], [], []>} : vector<8x128xbf16>, vector<128x128xbf16>, vector<8x128xf32> -> vector<8x128xf32>
    %46 = arith.addf %44, %45 : vector<8x128xf32>
    %cst_19 = arith.constant 9.99999974E-6 : f32
    %47 = vector.broadcast %cst_19 : f32 to vector<8x128xf32>
    %48 = arith.addf %46, %47 : vector<8x128xf32>
    %49 = math.rsqrt %48 : vector<8x128xf32>
    %50 = arith.mulf %38, %49 : vector<8x128xf32>
    %51 = vector.broadcast %29 : vector<1x128xf32> to vector<8x128xf32>
    %52 = arith.mulf %50, %51 : vector<8x128xf32>
    %53 = vector.broadcast %30 : vector<1x128xf32> to vector<8x128xf32>
    %54 = arith.addf %52, %53 : vector<8x128xf32>
    %55 = arith.truncf %54 : vector<8x128xf32> to vector<8x128xbf16>
    %c0_20 = arith.constant 0 : index
    %c0_21 = arith.constant 0 : index
    %56 = vector.load %arg7[%c0_20, %c0_21] : memref<128x1024xbf16, #tpu.memory_space<vmem>>, vector<128x1024xbf16>
    %cst_22 = arith.constant dense<0.000000e+00> : vector<8x1024xf32>
    %57 = tpu.matmul %55, %56, %cst_22 {dimension_numbers = #tpu.dot_dimension_numbers<[1], [0], [0], [1], [0, 0, 1, 1], [], []>} : vector<8x128xbf16>, vector<128x1024xbf16>, vector<8x1024xf32> -> vector<8x1024xf32>
    %c0_23 = arith.constant 0 : index
    %c0_24 = arith.constant 0 : index
    %58 = vector.load %arg8[%c0_23, %c0_24] : memref<1x1024xf32, #tpu.memory_space<vmem>>, vector<1x1024xf32>
    %59 = vector.broadcast %58 : vector<1x1024xf32> to vector<8x1024xf32>
    %60 = arith.addf %57, %59 : vector<8x1024xf32>
    %61 = vector.extract_strided_slice %60 {offsets = [0, 0], sizes = [8, 512], strides = [1, 1]} : vector<8x1024xf32> to vector<8x512xf32>
    %62 = arith.negf %61 : vector<8x512xf32>
    %63 = math.exp %62 : vector<8x512xf32>
    %cst_25 = arith.constant 1.000000e+00 : f32
    %64 = vector.broadcast %cst_25 : f32 to vector<8x512xf32>
    %65 = arith.addf %64, %63 : vector<8x512xf32>
    %66 = arith.divf %64, %65 : vector<8x512xf32>
    %67 = vector.extract_strided_slice %60 {offsets = [0, 512], sizes = [8, 512], strides = [1, 1]} : vector<8x1024xf32> to vector<8x512xf32>
    %68 = arith.mulf %66, %67 : vector<8x512xf32>
    %69 = arith.truncf %68 : vector<8x512xf32> to vector<8x512xbf16>
    %c0_26 = arith.constant 0 : index
    %c0_27 = arith.constant 0 : index
    %70 = vector.load %arg9[%c0_26, %c0_27] : memref<512x128xbf16, #tpu.memory_space<vmem>>, vector<512x128xbf16>
    %cst_28 = arith.constant dense<0.000000e+00> : vector<8x128xf32>
    %71 = tpu.matmul %69, %70, %cst_28 {dimension_numbers = #tpu.dot_dimension_numbers<[1], [0], [0], [1], [0, 0, 1, 1], [], []>} : vector<8x512xbf16>, vector<512x128xbf16>, vector<8x128xf32> -> vector<8x128xf32>
    %c0_29 = arith.constant 0 : index
    %c0_30 = arith.constant 0 : index
    %72 = vector.load %arg10[%c0_29, %c0_30] : memref<1x128xf32, #tpu.memory_space<vmem>>, vector<1x128xf32>
    %73 = vector.broadcast %72 : vector<1x128xf32> to vector<8x128xf32>
    %74 = arith.addf %71, %73 : vector<8x128xf32>
    %75 = arith.addf %28, %74 : vector<8x128xf32>
    %c0_31 = arith.constant 0 : index
    %c0_32 = arith.constant 0 : index
    %76 = vector.load %arg11[%c0_31, %c0_32] : memref<8x128xf32, #tpu.memory_space<vmem>>, vector<8x128xf32>
    tpu.vector_store %arg11[%c0_31, %c0_32], %75 {strides = array<i32>} : memref<8x128xf32, #tpu.memory_space<vmem>>, vector<8x128xf32>,
    return
  }
  func.func @transform_0(%arg0: i32) -> (i32, i32) {
    %c0_i32 = arith.constant 0 : i32
    %c0_i32_0 = arith.constant 0 : i32
    return %arg0, %c0_i32 : i32, i32
  }
  func.func @transform_1(%arg0: i32) -> (i32, i32) {
    %c0_i32 = arith.constant 0 : i32
    %c0_i32_0 = arith.constant 0 : i32
    %c0_i32_1 = arith.constant 0 : i32
    return %c0_i32, %c0_i32_0 : i32, i32
  }
  func.func @transform_2(%arg0: i32) -> (i32, i32) {
    %c0_i32 = arith.constant 0 : i32
    %c0_i32_0 = arith.constant 0 : i32
    %c0_i32_1 = arith.constant 0 : i32
    return %c0_i32, %c0_i32_0 : i32, i32
  }
  func.func @transform_3(%arg0: i32) -> (i32, i32) {
    %c0_i32 = arith.constant 0 : i32
    %c0_i32_0 = arith.constant 0 : i32
    %c0_i32_1 = arith.constant 0 : i32
    return %c0_i32, %c0_i32_0 : i32, i32
  }
  func.func @transform_4(%arg0: i32) -> (i32, i32) {
    %c0_i32 = arith.constant 0 : i32
    %c0_i32_0 = arith.constant 0 : i32
    %c0_i32_1 = arith.constant 0 : i32
    return %c0_i32, %c0_i32_0 : i32, i32
  }
  func.func @transform_5(%arg0: i32) -> (i32, i32) {
    %c0_i32 = arith.constant 0 : i32
    %c0_i32_0 = arith.constant 0 : i32
    %c0_i32_1 = arith.constant 0 : i32
    return %c0_i32, %c0_i32_0 : i32, i32
  }
  func.func @transform_6(%arg0: i32) -> (i32, i32) {
    %c0_i32 = arith.constant 0 : i32
    %c0_i32_0 = arith.constant 0 : i32
    %c0_i32_1 = arith.constant 0 : i32
    return %c0_i32, %c0_i32_0 : i32, i32
  }
  func.func @transform_7(%arg0: i32) -> (i32, i32) {
    %c0_i32 = arith.constant 0 : i32
    %c0_i32_0 = arith.constant 0 : i32
    %c0_i32_1 = arith.constant 0 : i32
    return %c0_i32, %c0_i32_0 : i32, i32
  }
  func.func @transform_8(%arg0: i32) -> (i32, i32) {
    %c0_i32 = arith.constant 0 : i32
    %c0_i32_0 = arith.constant 0 : i32
    %c0_i32_1 = arith.constant 0 : i32
    return %c0_i32, %c0_i32_0 : i32, i32
  }
  func.func @transform_9(%arg0: i32) -> (i32, i32) {
    %c0_i32 = arith.constant 0 : i32
    %c0_i32_0 = arith.constant 0 : i32
    %c0_i32_1 = arith.constant 0 : i32
    return %c0_i32, %c0_i32_0 : i32, i32
  }
  func.func @transform_10(%arg0: i32) -> (i32, i32) {
    %c0_i32 = arith.constant 0 : i32
    %c0_i32_0 = arith.constant 0 : i32
    return %arg0, %c0_i32 : i32, i32
  }
}

</mosaic_0001>

<bundles_post_ra>
// kernel: tpu_custom_call.1
= control target key start
LH: loop header
LB: loop body
LE: loop exit
PB: predicated region body
PF: predicated region fallthrough
CT: control target
= control target key end

     0   :  { %15 = vsyncpa [#allocation3], 0  ;;  %s2129_s0 = inlined_call_operand.hbm [shape: f32[8,128], index: 0, kind: input, shape index: {}]   ;;  %s2130_s1 = inlined_call_operand.hbm [shape: bf16[128,128], index: 1, kind: input, shape index: {}]   ;;  %s2131_s2 = inlined_call_operand.vmem [shape: f32[1,128], index: 2, kind: input, shape index: {}]   ;;  %s2132_s3 = inlined_call_operand.vmem [shape: f32[1,128], index: 3, kind: input, shape index: {}]   ;;  %s2133_s4 = inlined_call_operand.vmem [shape: f32[1,128], index: 4, kind: input, shape index: {}]   ;;  %s2134_s5 = inlined_call_operand.vmem [shape: f32[1,128], index: 5, kind: input, shape index: {}]   ;;  %s2135_s6 = inlined_call_operand.hbm [shape: bf16[128,1024], index: 6, kind: input, shape index: {}]   ;;  %s2136_s7 = inlined_call_operand.hbm [shape: f32[1,1024], index: 7, kind: input, shape index: {}]   ;;  %s2137_s8 = inlined_call_operand.hbm [shape: bf16[512,128], index: 8, kind: input, shape index: {}]   ;;  %s2138_s9 = inlined_call_operand.vmem [shape: f32[1,128], index: 9, kind: input, shape index: {}]   ;;  %s2139_s10 = inlined_call_operand.hbm [shape: f32[8,128], index: 10, kind: output, shape index: {}]  }
   0x1   :  { %16 = vsyncpa [#allocation6], 0 }
   0x2   :  { %17 = vsyncpa [#allocation9], 0  ;;  %s34_s15 = sshll.u32 %s2130_s1, 4  ;;  %s35_s15 = int_to_ptr.hbm [resolvable:$true] %s34_s15 }
   0x3   :  { %18 = vsyncpa [#allocation4], 0  ;;  %s1979_s16 = smov [#allocation5]   ;;  %s69_s20 = sshll.u32 %s2136_s7, 4  ;;  %s70_s20 = int_to_ptr.hbm [resolvable:$true] %s69_s20 }
   0x4   :  { %s36_s17 = sshll.u32 %s1979_s16, 4  ;;  %s1980_s21 = smov 64   ;;  %s37_s17 = int_to_ptr.vmem [resolvable:$true] %s36_s17 }
   0x5   :  { %s1981_s22 = smov 4   ;;  %s1982_s23 = smov [#allocation8]  }
   0x6   :  { %42 = dma.hbm_to_vmem [thread:$0]  %s35_s15, 1024, %s37_s17, [#allocation6], %s1980_s21, %s1980_s21, %s1981_s22  }
   0x7   :  { %s71_s24 = sshll.u32 %s1982_s23, 4  ;;  %s24_s26 = sshll.u32 %s2129_s0, 4  ;;  %s72_s24 = int_to_ptr.vmem [resolvable:$true] %s71_s24  ;;  %s25_s26 = int_to_ptr.hbm [resolvable:$true] %s24_s26 }
   0x8   :  { %74 = dma.hbm_to_vmem [thread:$0]  %s70_s20, 128, %s72_s24, [#allocation9]  }
   0x9   :  { %s55_s7 = sshll.u32 %s2135_s6, 4  ;;  %s1983_s29 = smov [#allocation2]   ;;  %s56_s7 = int_to_ptr.hbm [resolvable:$true] %s55_s7 }
   0xa   :  { %s26_s30 = sshll.u32 %s1983_s29, 4  ;;  %s1984_s11 = smov [#allocation7]   ;;  %s27_s30 = int_to_ptr.vmem [resolvable:$true] %s26_s30 }
   0xb   :  { %29 = dma.hbm_to_vmem [thread:$0]  %s25_s26, 128, %s27_s30, [#allocation3]  }
   0xc   :  { %s57_s12 = sshll.u32 %s1984_s11, 4  ;;  %s1985_s13 = smov 512   ;;  %s58_s12 = int_to_ptr.vmem [resolvable:$true] %s57_s12 }
   0xd   :  { %s1986_s14 = smov 32   ;;  %s79_s16 = sshll.u32 %s2137_s8, 4  ;;  %s80_s16 = int_to_ptr.hbm [resolvable:$true] %s79_s16 }
   0xe   :  { %63 = dma.hbm_to_vmem [thread:$0]  %s56_s7, 8192, %s58_s12, [#allocation6], %s1985_s13, %s1985_s13, %s1986_s14  }
   0xf   :  { %s1987_s17 = smov [#allocation10]  }
  0x10   :  { %s81_s18 = sshll.u32 %s1987_s17, 4  ;;  %s82_s18 = int_to_ptr.vmem [resolvable:$true] %s81_s18 }
  0x11   :  { %87 = dma.hbm_to_vmem [thread:$0]  %s80_s16, 4096, %s82_s18, [#allocation9], %s1980_s21, %s1980_s21, %s1981_s22  }
  0x12   :  { %1971 = dma.done.wait [#allocation3], 128  }
  0x13   :  { %1972 = vsyncadd [#allocation3], 4294967168 }
  0x14   :  { %1973 = dma.done.wait [#allocation6], 9216  }
  0x15   :  { %1974 = vsyncadd [#allocation6], 4294958080 }
  0x16   :  { %1975 = dma.done.wait [#allocation9], 4224  }
  0x17   :  { %1976 = vsyncadd [#allocation9], 4294963072  ;;  %v1695_v0 = vld [vmem:[#allocation5 + $0x38] sm:$0xff]  ;;  %v1694_v1 = vld [vmem:[#allocation5 + $0x30] sm:$0xff]  ;;  %s1988_s23 = smov [#allocation11]   ;;  %s1256_s26 = sshll.u32 %s2139_s10, 4  ;;  %s1257_s26 = int_to_ptr.hbm [resolvable:$true] %s1256_s26 }
  0x18   :  { %181 = vmatpush.bf16.msra.mxu0 %v1695_v0  ;;  %194 = vmatpush.bf16.msra.mxu1 %v1695_v0  ;;  %v1693_v2 = vld [vmem:[#allocation5 + $0x28] sm:$0xff]  ;;  %v1692_v3 = vld [vmem:[#allocation5 + $0x20] sm:$0xff]  ;;  %v1691_v4 = vld [vmem:[#allocation5 + $0x18] sm:$0xff]  ;;  %s1254_s24 = sshll.u32 %s1988_s23, 4  ;;  %s1255_s24 = int_to_ptr.vmem [resolvable:$true] %s1254_s24 }
  0x19   :  { %226 = vmatpush.bf16.msra.mxu3 %v1695_v0  ;;  %213 = vmatpush.bf16.msra.mxu2 %v1695_v0  ;;  %v2065_v5 = vld [vmem:[#allocation2] sm:$0xff]  ;;  %v1690_v7 = vld [vmem:[#allocation5 + $0x10] sm:$0xff]  ;;  %v1689_v9 = vld [vmem:[#allocation5 + $0x8] sm:$0xff] }
  0x1a   :  { %v129_v6 = vpack.c.bf16 %v2065_v5, %v2065_v5  ;;  %v1688_v11 = vld [vmem:[#allocation5] sm:$0xff]  ;;  %v1802_v36 = vld [vmem:[%s2131_s2] ss:$0 sm:$0xff]  ;;  %v1534_v52 = vld [vmem:[#allocation7 + $0x1c8] sm:$0xf] }
  0x1b   :  { %v1803_v39 = vld [vmem:[%s2132_s3] ss:$0 sm:$0xff]  ;;  %v1526_v47 = vld [vmem:[#allocation7 + $0x1c0] sm:$0xf]  ;;  %v1752_v49 = vld [vmem:[#allocation7 + $0x1c4] sm:$0xf] }
  0x1c   :  { %182 = vmatpush.bf16.msra.mxu0 %v1694_v1  ;;  %195 = vmatpush.bf16.msra.mxu1 %v1694_v1  ;;  %v130_v8 = vunpack.c.l.bf16 %v129_v6  ;;  %v1756_v48 = vld [vmem:[#allocation7 + $0x1dc] sm:$0xf0]  ;;  %v1528_v51 = vld [vmem:[#allocation7 + $0x1e0] sm:$0xf0]  ;;  %v1757_v53 = vld [vmem:[#allocation7 + $0x1e4] sm:$0xf0] }
  0x1d   :  { %227 = vmatpush.bf16.msra.mxu3 %v1694_v1  ;;  %214 = vmatpush.bf16.msra.mxu2 %v1694_v1  ;;  %v1527_v50 = vor.u32 %v1756_v48, %v1526_v47  ;;  %v1531_v54 = vor.u32 %v1752_v49, %v1528_v51  ;;  %v1535_v55 = vor.u32 %v1757_v53, %v1534_v52  ;;  %v1753_v56 = vld [vmem:[#allocation7 + $0x1cc] sm:$0xf]  ;;  %v1494_v58 = vld [vmem:[#allocation7 + $0x180] sm:$0xf]  ;;  %v1744_v61 = vld [vmem:[#allocation7 + $0x184] sm:$0xf] }
  0x1e   :  { %v131_v10 = vsub.f32 %v2065_v5, %v130_v8  ;;  %v1536_v57 = vld [vmem:[#allocation7 + $0x1e8] sm:$0xf0]  ;;  %v1748_v60 = vld [vmem:[#allocation7 + $0x19c] sm:$0xf0]  ;;  %v1496_v62 = vld [vmem:[#allocation7 + $0x1a0] sm:$0xf0] }
  0x1f   :  { %v1539_v59 = vor.u32 %v1753_v56, %v1536_v57  ;;  %v1495_v63 = vor.u32 %v1748_v60, %v1494_v58  ;;  %v1400_v47 = vld [vmem:[#allocation7 + $0xe0] sm:$0xf0]  ;;  %v1406_v48 = vld [vmem:[#allocation7 + $0xc8] sm:$0xf]  ;;  %v1721_v52 = vld [vmem:[#allocation7 + $0xcc] sm:$0xf] }
  0x20   :  { %183 = vmatpush.bf16.msra.mxu0 %v1693_v2  ;;  %196 = vmatpush.bf16.msra.mxu1 %v1693_v2  ;;  %v132_v12 = vpack.c.bf16 %v131_v10, %v131_v10  ;;  %v1725_v49 = vld [vmem:[#allocation7 + $0xe4] sm:$0xf0]  ;;  %v1408_v53 = vld [vmem:[#allocation7 + $0xe8] sm:$0xf0]  ;;  %v1716_v56 = vld [vmem:[#allocation7 + $0x9c] sm:$0xf0] }
  0x21   :  { %228 = vmatpush.bf16.msra.mxu3 %v1693_v2  ;;  %215 = vmatpush.bf16.msra.mxu2 %v1693_v2  ;;  %v1407_v51 = vor.u32 %v1725_v49, %v1406_v48  ;;  %v1712_v57 = vld [vmem:[#allocation7 + $0x84] sm:$0xf]  ;;  %v1374_v60 = vld [vmem:[#allocation7 + $0x88] sm:$0xf]  ;;  %v1751_v48 = vld [vmem:[#allocation7 + $0x1b4] sm:$0xf0] }
  0x22   :  { %v1747_v49 = vld [vmem:[#allocation7 + $0x19c] sm:$0xf] }
  0x24   :  { %184 = vmatpush.bf16.msra.mxu0 %v1692_v3  ;;  %197 = vmatpush.bf16.msra.mxu1 %v1692_v3 }
  0x25   :  { %229 = vmatpush.bf16.msra.mxu3 %v1692_v3  ;;  %216 = vmatpush.bf16.msra.mxu2 %v1692_v3 }
  0x28   :  { %185 = vmatpush.bf16.msra.mxu0 %v1691_v4  ;;  %198 = vmatpush.bf16.msra.mxu1 %v1691_v4 }
  0x29   :  { %230 = vmatpush.bf16.msra.mxu3 %v1691_v4  ;;  %217 = vmatpush.bf16.msra.mxu2 %v1691_v4 }
  0x2c   :  { %186 = vmatpush.bf16.msra.mxu0 %v1690_v7  ;;  %199 = vmatpush.bf16.msra.mxu1 %v1690_v7 }
  0x2d   :  { %231 = vmatpush.bf16.msra.mxu3 %v1690_v7  ;;  %218 = vmatpush.bf16.msra.mxu2 %v1690_v7 }
  0x30   :  { %187 = vmatpush.bf16.msra.mxu0 %v1689_v9  ;;  %200 = vmatpush.bf16.msra.mxu1 %v1689_v9 }
  0x31   :  { %232 = vmatpush.bf16.msra.mxu3 %v1689_v9  ;;  %219 = vmatpush.bf16.msra.mxu2 %v1689_v9 }
  0x34   :  { %188 = vmatpush.bf16.msra.mxu0 %v1688_v11  ;;  %201 = vmatpush.bf16.msra.mxu1 %v1688_v11 }
  0x35   :  { %233 = vmatpush.bf16.msra.mxu3 %v1688_v11  ;;  %220 = vmatpush.bf16.msra.mxu2 %v1688_v11 }
  0x37   :  { %189 = vmatmul.bf16.vlgmr.msra.gmra.mxu0 %v132_v12  ;;  %202 = vmatmul.bf16.vlgmr.msra.gmra.mxu1 %v129_v6 }
  0x38   :  { %279 = vmatpush.bf16.msrb.mxu1 %v1695_v0  ;;  %266 = vmatpush.bf16.msrb.mxu0 %v1695_v0 }
  0x39   :  { %311 = vmatpush.bf16.msrb.mxu3 %v1695_v0  ;;  %298 = vmatpush.bf16.msrb.mxu2 %v1695_v0  ;;  %v1499_v0 = vor.u32 %v1744_v61, %v1496_v62  ;;  %v1717_v61 = vld [vmem:[#allocation7 + $0xa4] sm:$0xf0] }
  0x3c   :  { %280 = vmatpush.bf16.msrb.mxu1 %v1694_v1  ;;  %267 = vmatpush.bf16.msrb.mxu0 %v1694_v1 }
  0x3d   :  { %312 = vmatpush.bf16.msrb.mxu3 %v1694_v1  ;;  %299 = vmatpush.bf16.msrb.mxu2 %v1694_v1  ;;  %v1502_v1 = vld [vmem:[#allocation7 + $0x188] sm:$0xf] }
  0x40   :  { %281 = vmatpush.bf16.msrb.mxu1 %v1693_v2  ;;  %268 = vmatpush.bf16.msrb.mxu0 %v1693_v2 }
  0x41   :  { %313 = vmatpush.bf16.msrb.mxu3 %v1693_v2  ;;  %300 = vmatpush.bf16.msrb.mxu2 %v1693_v2  ;;  %v1749_v2 = vld [vmem:[#allocation7 + $0x1a4] sm:$0xf0] }
  0x44   :  { %282 = vmatpush.bf16.msrb.mxu1 %v1692_v3  ;;  %269 = vmatpush.bf16.msrb.mxu0 %v1692_v3 }
  0x45   :  { %314 = vmatpush.bf16.msrb.mxu3 %v1692_v3  ;;  %301 = vmatpush.bf16.msrb.mxu2 %v1692_v3  ;;  %v1745_v3 = vld [vmem:[#allocation7 + $0x18c] sm:$0xf] }
  0x48   :  { %283 = vmatpush.bf16.msrb.mxu1 %v1691_v4  ;;  %270 = vmatpush.bf16.msrb.mxu0 %v1691_v4 }
  0x49   :  { %315 = vmatpush.bf16.msrb.mxu3 %v1691_v4  ;;  %302 = vmatpush.bf16.msrb.mxu2 %v1691_v4  ;;  %v1503_v4 = vor.u32 %v1749_v2, %v1502_v1  ;;  %v1376_v1 = vld [vmem:[#allocation7 + $0xa8] sm:$0xf0] }
  0x4c   :  { %284 = vmatpush.bf16.msrb.mxu1 %v1690_v7  ;;  %271 = vmatpush.bf16.msrb.mxu0 %v1690_v7 }
  0x4d   :  { %316 = vmatpush.bf16.msrb.mxu3 %v1690_v7  ;;  %303 = vmatpush.bf16.msrb.mxu2 %v1690_v7 }
  0x50   :  { %285 = vmatpush.bf16.msrb.mxu1 %v1689_v9  ;;  %272 = vmatpush.bf16.msrb.mxu0 %v1689_v9 }
  0x51   :  { %317 = vmatpush.bf16.msrb.mxu3 %v1689_v9  ;;  %304 = vmatpush.bf16.msrb.mxu2 %v1689_v9 }
  0x54   :  { %286 = vmatpush.bf16.msrb.mxu1 %v1688_v11  ;;  %273 = vmatpush.bf16.msrb.mxu0 %v1688_v11 }
  0x55   :  { %318 = vmatpush.bf16.msrb.mxu3 %v1688_v11  ;;  %305 = vmatpush.bf16.msrb.mxu2 %v1688_v11 }
  0x58   :  { %747 = vmatpush.bf16.msra.mxu0 %v1527_v50  ;;  %760 = vmatpush.bf16.msra.mxu1 %v1531_v54  ;;  %v1411_v54 = vor.u32 %v1721_v52, %v1408_v53  ;;  %v1478_v53 = vld [vmem:[#allocation7 + $0x150] sm:$0xf] }
  0x5c   :  { %748 = vmatpush.bf16.msra.mxu0 %v1495_v63  ;;  %761 = vmatpush.bf16.msra.mxu1 %v1499_v0  ;;  %v1375_v63 = vor.u32 %v1717_v61, %v1374_v60  ;;  %v1713_v0 = vld [vmem:[#allocation7 + $0x8c] sm:$0xf] }
  0x5d   :  { %v1379_v2 = vor.u32 %v1713_v0, %v1376_v1  ;;  %v1446_v1 = vld [vmem:[#allocation7 + $0x110] sm:$0xf] }
  0xb4   :  { %v190_v13 = vpop.f32.mrf.mxu0  ;;  %v203_v14 = vpop.f32.mrf.mxu1 }
  0xb5   :  { %v204_v15 = vadd.f32 %v203_v14, %v190_v13 }
  0xb7   :  { %v207_v16 = vsub.f32 %v2065_v5, %v204_v15 }
  0xb9   :  { %v208_v17 = vmul.f32 %v207_v16, %v207_v16 }
  0xbb   :  { %v209_v18 = vpack.c.bf16 %v208_v17, %v208_v17 }
  0xbc   :  { %v192_v19 = vpop.f32.mrf.mxu0  ;;  %v205_v20 = vpop.f32.mrf.mxu1 }
  0xbd   :  { %v210_v21 = vunpack.c.l.bf16 %v209_v18  ;;  %234 = vmatmul.bf16.vlgmr.msra.gmra.mxu3 %v209_v18  ;;  %v1462_v18 = vld [vmem:[#allocation7 + $0x140] sm:$0xf]  ;;  %v1736_v20 = vld [vmem:[#allocation7 + $0x144] sm:$0xf] }
  0xbe   :  { %786 = vmatpush.bf16.msra.mxu3 %v1539_v59  ;;  %v1740_v19 = vld [vmem:[#allocation7 + $0x15c] sm:$0xf0]  ;;  %v1368_v59 = vld [vmem:[#allocation7 + $0xa0] sm:$0xf0] }
  0xbf   :  { %v211_v22 = vsub.f32 %v208_v17, %v210_v21  ;;  %v1463_v21 = vor.u32 %v1740_v19, %v1462_v18  ;;  %v1371_v62 = vor.u32 %v1712_v57, %v1368_v59  ;;  %v1696_v18 = vld [vmem:[#allocation7 + $0x4] sm:$0xf]  ;;  %v1480_v57 = vld [vmem:[#allocation7 + $0x170] sm:$0xf0]  ;;  %v1743_v59 = vld [vmem:[#allocation7 + $0x174] sm:$0xf0] }
  0xc1   :  { %v212_v23 = vpack.c.bf16 %v211_v22, %v211_v22  ;;  %v1464_v22 = vld [vmem:[#allocation7 + $0x160] sm:$0xf0]  ;;  %749 = vmatpush.bf16.msra.mxu0 %v1463_v21  ;;  %v1310_v21 = vld [vmem:[#allocation7 + $0x8] sm:$0xf] }
  0xc3   :  { %221 = vmatmul.bf16.vlgmr.msra.gmra.mxu2 %v212_v23  ;;  %v1470_v23 = vld [vmem:[#allocation7 + $0x148] sm:$0xf] }
  0xc4   :  { %773 = vmatpush.bf16.msra.mxu2 %v1535_v55  ;;  %v1366_v55 = vld [vmem:[#allocation7 + $0x80] sm:$0xf] }
  0xc5   :  { %v1367_v58 = vor.u32 %v1716_v56, %v1366_v55  ;;  %v1738_v55 = vld [vmem:[#allocation7 + $0x154] sm:$0xf] }
  0xc6   :  { %v1483_v60 = vor.u32 %v1738_v55, %v1480_v57  ;;  %v1698_v57 = vld [vmem:[#allocation7 + $0x14] sm:$0xf] }
  0xc8   :  { %774 = vmatpush.bf16.msra.mxu2 %v1503_v4  ;;  %v1708_v4 = vld [vmem:[#allocation7 + $0x5c] sm:$0xf0] }
 0x140   :  { %v235_v24 = vpop.f32.mrf.mxu3 }
 0x146   :  { %v222_v25 = vpop.f32.mrf.mxu2 }
 0x147   :  { %v236_v26 = vadd.f32 %v235_v24, %v222_v25  ;;  %v1741_v24 = vld [vmem:[#allocation7 + $0x164] sm:$0xf0]  ;;  %v1467_v25 = vor.u32 %v1736_v20, %v1464_v22  ;;  %v1304_v20 = vld [vmem:[#allocation7 + $0x20] sm:$0xf0] }
 0x148   :  { %v237_v27 = vpop.f32.mrf.mxu3  ;;  %v1701_v22 = vld [vmem:[#allocation7 + $0x24] sm:$0xf0] }
 0x149   :  { %v239_v28 = vadd.f32 1e-05, %v236_v26  ;;  %v1471_v26 = vor.u32 %v1741_v24, %v1470_v23  ;;  %v1737_v27 = vld [vmem:[#allocation7 + $0x14c] sm:$0xf]  ;;  %762 = vmatpush.bf16.msra.mxu1 %v1467_v25  ;;  %v1307_v23 = vor.u32 %v1696_v18, %v1304_v20  ;;  %v1311_v24 = vor.u32 %v1701_v22, %v1310_v21  ;;  %v1422_v20 = vld [vmem:[#allocation7 + $0xd8] sm:$0xf] }
 0x14a   :  { %v1697_v25 = vld [vmem:[#allocation7 + $0xc] sm:$0xf]  ;;  %v1727_v21 = vld [vmem:[#allocation7 + $0xf4] sm:$0xf0] }
 0x14b   :  { %1807 = vrsqrt.f32 %v239_v28  ;;  %vm246_vm1 = vweird.f32 %v239_v28  ;;  %775 = vmatpush.bf16.msra.mxu2 %v1471_v26  ;;  %v1312_v26 = vld [vmem:[#allocation7 + $0x28] sm:$0xf0] }
 0x14e   :  { %v224_v29 = vpop.f32.mrf.mxu2 }
 0x14f   :  { %v1430_v29 = vld [vmem:[#allocation7 + $0x100] sm:$0xf] }
 0x151   :  { %v1808_v30 = vpop.eup %1807 }
 0x152   :  { %v241_v31 = vmul.f32 %v1808_v30, %v239_v28  ;;  %vm247_vm0 = vweird.f32 %v1808_v30  ;;  %v1472_v28 = vld [vmem:[#allocation7 + $0x168] sm:$0xf0] }
 0x153   :  { %vm248_vm2 = vmor %vm246_vm1, %vm247_vm0 }
 0x154   :  { %v242_v32 = vmul.f32 %v1808_v30, %v241_v31  ;;  %v1732_v31 = vld [vmem:[#allocation7 + $0x11c] sm:$0xf0] }
 0x156   :  { %v243_v33 = vmul.f32 0.5, %v242_v32  ;;  %v1728_v32 = vld [vmem:[#allocation7 + $0x104] sm:$0xf] }
 0x158   :  { %v244_v34 = vsub.f32 1.5, %v243_v33  ;;  %v1432_v33 = vld [vmem:[#allocation7 + $0x120] sm:$0xf0] }
 0x15a   :  { %v245_v35 = vmul.f32 %v1808_v30, %v244_v34  ;;  %v1431_v34 = vor.u32 %v1732_v31, %v1430_v29  ;;  %v1758_v29 = vld [vmem:[#allocation7 + $0x1ec] sm:$0xf0]  ;;  %v1544_v31 = vld [vmem:[#allocation7 + $0x1f0] sm:$0xf0] }
 0x15c   :  { %v249_v37 = vsel %vm248_vm2, %v1808_v30, %v245_v35  ;;  %v1475_v30 = vor.u32 %v1737_v27, %v1472_v28  ;;  %v1435_v35 = vor.u32 %v1728_v32, %v1432_v33  ;;  %750 = vmatpush.bf16.msra.mxu0 %v1431_v34  ;;  %v1542_v27 = vld [vmem:[#allocation7 + $0x1d0] sm:$0xf]  ;;  %v1315_v28 = vor.u32 %v1697_v25, %v1312_v26  ;;  %v1550_v34 = vld [vmem:[#allocation7 + $0x1d8] sm:$0xf]  ;;  %v1723_v25 = vld [vmem:[#allocation7 + $0xdc] sm:$0xf] }
 0x15d   :  { %v250_v38 = vmul.f32 %v249_v37, %v207_v16  ;;  %v1733_v37 = vld [vmem:[#allocation7 + $0x124] sm:$0xf0]  ;;  %v1543_v32 = vor.u32 %v1758_v29, %v1542_v27  ;;  %v1424_v26 = vld [vmem:[#allocation7 + $0xf8] sm:$0xf0]  ;;  %v1382_v27 = vld [vmem:[#allocation7 + $0x90] sm:$0xf] }
 0x15e   :  { %763 = vmatpush.bf16.msra.mxu1 %v1435_v35  ;;  %v1759_v35 = vld [vmem:[#allocation7 + $0x1f4] sm:$0xf0]  ;;  %v1427_v29 = vor.u32 %v1723_v25, %v1424_v26  ;;  %v1773_v25 = vld [vmem:[#allocation10 + $0x68] sm:$0xff] }
 0x15f   :  { %v254_v40 = vmul.f32 %v1802_v36, %v250_v38  ;;  %v1438_v36 = vld [vmem:[#allocation7 + $0x108] sm:$0xf]  ;;  %v1729_v38 = vld [vmem:[#allocation7 + $0x10c] sm:$0xf]  ;;  %v1782_v26 = vld [vmem:[#allocation10 + $0xb0] sm:$0xff] }
 0x161   :  { %v258_v41 = vadd.f32 %v1803_v39, %v254_v40  ;;  %v1439_v39 = vor.u32 %v1733_v37, %v1438_v36  ;;  %v1440_v40 = vld [vmem:[#allocation7 + $0x128] sm:$0xf0]  ;;  %v1755_v36 = vld [vmem:[#allocation7 + $0x1dc] sm:$0xf]  ;;  %v1551_v37 = vor.u32 %v1759_v35, %v1550_v34 }
 0x163   :  { %v2078_v42 = vadd.f32 %v258_v41, %v2065_v5  ;;  %v1504_v5 = vld [vmem:[#allocation7 + $0x1a8] sm:$0xf0]  ;;  %v1443_v41 = vor.u32 %v1729_v38, %v1440_v40  ;;  %776 = vmatpush.bf16.msra.mxu2 %v1439_v39  ;;  %v1552_v38 = vld [vmem:[#allocation7 + $0x1f8] sm:$0xf0]  ;;  %v1510_v39 = vld [vmem:[#allocation7 + $0x190] sm:$0xf] }
 0x164   :  { %v1507_v6 = vor.u32 %v1745_v3, %v1504_v5  ;;  %v1334_v3 = vld [vmem:[#allocation7 + $0x40] sm:$0xf]  ;;  %v1704_v5 = vld [vmem:[#allocation7 + $0x44] sm:$0xf]  ;;  %v1750_v40 = vld [vmem:[#allocation7 + $0x1ac] sm:$0xf0] }
 0x165   :  { %v262_v43 = vpack.c.bf16 %v2078_v42, %v2078_v42 }
 0x166   :  { %787 = vmatpush.bf16.msra.mxu3 %v1507_v6  ;;  %v1335_v6 = vor.u32 %v1708_v4, %v1334_v3 }
 0x167   :  { %v263_v44 = vunpack.c.l.bf16 %v262_v43  ;;  %287 = vmatmul.bf16.vlgmr.msrb.gmra.mxu1 %v262_v43  ;;  %v1398_v43 = vld [vmem:[#allocation7 + $0xc0] sm:$0xf]  ;;  %777 = vmatpush.bf16.msra.mxu2 %v1407_v51 }
 0x169   :  { %v264_v45 = vsub.f32 %v2078_v42, %v263_v44  ;;  %v1724_v44 = vld [vmem:[#allocation7 + $0xdc] sm:$0xf0] }
 0x16a   :  { %788 = vmatpush.bf16.msra.mxu3 %v1475_v30  ;;  %v1754_v30 = vld [vmem:[#allocation7 + $0x1d4] sm:$0xf] }
 0x16b   :  { %v265_v46 = vpack.c.bf16 %v264_v45, %v264_v45  ;;  %v1720_v45 = vld [vmem:[#allocation7 + $0xc4] sm:$0xf]  ;;  %778 = vmatpush.bf16.msra.mxu2 %v1375_v63  ;;  %v1547_v33 = vor.u32 %v1754_v30, %v1544_v31  ;;  %v1488_v63 = vld [vmem:[#allocation7 + $0x178] sm:$0xf0]  ;;  %v1718_v30 = vld [vmem:[#allocation7 + $0xac] sm:$0xf0] }
 0x16c   :  { %v1403_v50 = vor.u32 %v1720_v45, %v1400_v47  ;;  %v1512_v45 = vld [vmem:[#allocation7 + $0x1b0] sm:$0xf0]  ;;  %v1383_v34 = vor.u32 %v1718_v30, %v1382_v27  ;;  %v1790_v27 = vld [vmem:[#allocation10 + $0xf0] sm:$0xff] }
 0x16d   :  { %274 = vmatmul.bf16.vlgmr.msrb.gmra.mxu0 %v265_v46  ;;  %v1399_v46 = vor.u32 %v1724_v44, %v1398_v43  ;;  %v1511_v43 = vor.u32 %v1750_v40, %v1510_v39  ;;  %v1746_v44 = vld [vmem:[#allocation7 + $0x194] sm:$0xf] }
 0x16e   :  { %789 = vmatpush.bf16.msra.mxu3 %v1443_v41  ;;  %764 = vmatpush.bf16.msra.mxu1 %v1403_v50  ;;  %v1555_v41 = vor.u32 %v1755_v36, %v1552_v38  ;;  %v1515_v47 = vor.u32 %v1746_v44, %v1512_v45  ;;  %v1520_v50 = vld [vmem:[#allocation7 + $0x1b8] sm:$0xf0]  ;;  %v1714_v31 = vld [vmem:[#allocation7 + $0x94] sm:$0xf]  ;;  %v1390_v36 = vld [vmem:[#allocation7 + $0x98] sm:$0xf] }
 0x16f   :  { %751 = vmatpush.bf16.msra.mxu0 %v1399_v46  ;;  %v1518_v46 = vld [vmem:[#allocation7 + $0x198] sm:$0xf]  ;;  %v1523_v52 = vor.u32 %v1747_v49, %v1520_v50  ;;  %v1715_v38 = vld [vmem:[#allocation7 + $0x9c] sm:$0xf]  ;;  %v1710_v45 = vld [vmem:[#allocation7 + $0x6c] sm:$0xf0] }
 0x170   :  { %v1519_v51 = vor.u32 %v1751_v48, %v1518_v46  ;;  %v1706_v46 = vld [vmem:[#allocation7 + $0x54] sm:$0xf]  ;;  %v1358_v48 = vld [vmem:[#allocation7 + $0x58] sm:$0xf]  ;;  %v1707_v50 = vld [vmem:[#allocation7 + $0x5c] sm:$0xf] }
 0x171   :  { %v1711_v49 = vld [vmem:[#allocation7 + $0x74] sm:$0xf0]  ;;  %v1781_v30 = vld [vmem:[#allocation10 + $0xa8] sm:$0xff] }
 0x172   :  { %790 = vmatpush.bf16.msra.mxu3 %v1411_v54  ;;  %765 = vmatpush.bf16.msra.mxu1 %v1371_v62  ;;  %v1742_v54 = vld [vmem:[#allocation7 + $0x16c] sm:$0xf0]  ;;  %v1739_v62 = vld [vmem:[#allocation7 + $0x15c] sm:$0xf]  ;;  %v1359_v55 = vor.u32 %v1711_v49, %v1358_v48 }
 0x173   :  { %752 = vmatpush.bf16.msra.mxu0 %v1367_v58  ;;  %v1479_v56 = vor.u32 %v1742_v54, %v1478_v53  ;;  %v1486_v58 = vld [vmem:[#allocation7 + $0x158] sm:$0xf]  ;;  %v1491_v0 = vor.u32 %v1739_v62, %v1488_v63  ;;  %v1360_v53 = vld [vmem:[#allocation7 + $0x78] sm:$0xf0]  ;;  %v1318_v54 = vld [vmem:[#allocation7 + $0x10] sm:$0xf] }
 0x174   :  { %v1487_v61 = vor.u32 %v1743_v59, %v1486_v58  ;;  %v1320_v58 = vld [vmem:[#allocation7 + $0x30] sm:$0xf0]  ;;  %v1703_v62 = vld [vmem:[#allocation7 + $0x34] sm:$0xf0]  ;;  %v1699_v63 = vld [vmem:[#allocation7 + $0x1c] sm:$0xf] }
 0x176   :  { %791 = vmatpush.bf16.msra.mxu3 %v1379_v2  ;;  %v1734_v2 = vld [vmem:[#allocation7 + $0x12c] sm:$0xf0] }
 0x177   :  { %753 = vmatpush.bf16.msra.mxu0 %v1335_v6  ;;  %v1447_v4 = vor.u32 %v1734_v2, %v1446_v1  ;;  %v1448_v6 = vld [vmem:[#allocation7 + $0x130] sm:$0xf0]  ;;  %v1323_v2 = vor.u32 %v1698_v57, %v1320_v58 }
 0x178   :  { %v1777_v58 = vld [vmem:[#allocation10 + $0x88] sm:$0xff] }
 0x1e4   :  { %v288_v7 = vpop.f32.mrf.mxu1 }
 0x1ea   :  { %v275_v8 = vpop.f32.mrf.mxu0 }
 0x1eb   :  { %v289_v9 = vadd.f32 %v288_v7, %v275_v8  ;;  %v1336_v7 = vld [vmem:[#allocation7 + $0x60] sm:$0xf0]  ;;  %v1342_v8 = vld [vmem:[#allocation7 + $0x48] sm:$0xf] }
 0x1ec   :  { %v290_v10 = vpop.f32.mrf.mxu1 }
 0x1ed   :  { %v2084_v11 = vsub.f32 %v2078_v42, %v289_v9  ;;  %v1709_v9 = vld [vmem:[#allocation7 + $0x64] sm:$0xf0]  ;;  %v1339_v10 = vor.u32 %v1704_v5, %v1336_v7  ;;  %v1730_v5 = vld [vmem:[#allocation7 + $0x114] sm:$0xf]  ;;  %v1454_v7 = vld [vmem:[#allocation7 + $0x118] sm:$0xf] }
 0x1ef   :  { %v293_v12 = vmul.f32 %v2084_v11, %v2084_v11  ;;  %766 = vmatpush.bf16.msra.mxu1 %v1339_v10  ;;  %v1731_v10 = vld [vmem:[#allocation7 + $0x11c] sm:$0xf] }
 0x1f1   :  { %v294_v13 = vpack.c.bf16 %v293_v12, %v293_v12 }
 0x1f2   :  { %v277_v14 = vpop.f32.mrf.mxu0 }
 0x1f3   :  { %v295_v15 = vunpack.c.l.bf16 %v294_v13  ;;  %319 = vmatmul.bf16.vlgmr.msrb.gmra.mxu3 %v294_v13  ;;  %v1705_v13 = vld [vmem:[#allocation7 + $0x4c] sm:$0xf]  ;;  %767 = vmatpush.bf16.msra.mxu1 %v1307_v23 }
 0x1f4   :  { %v1344_v14 = vld [vmem:[#allocation7 + $0x68] sm:$0xf0] }
 0x1f5   :  { %v296_v16 = vsub.f32 %v293_v12, %v295_v15  ;;  %v1343_v12 = vor.u32 %v1709_v9, %v1342_v8  ;;  %v1347_v15 = vor.u32 %v1705_v13, %v1344_v14  ;;  %v1451_v8 = vor.u32 %v1730_v5, %v1448_v6  ;;  %v1735_v9 = vld [vmem:[#allocation7 + $0x134] sm:$0xf0] }
 0x1f6   :  { %v1455_v13 = vor.u32 %v1735_v9, %v1454_v7 }
 0x1f7   :  { %v297_v17 = vpack.c.bf16 %v296_v16, %v296_v16  ;;  %779 = vmatpush.bf16.msra.mxu2 %v1343_v12  ;;  %v1302_v16 = vld [vmem:[#allocation7] sm:$0xf]  ;;  %792 = vmatpush.bf16.msra.mxu3 %v1347_v15  ;;  %v1456_v12 = vld [vmem:[#allocation7 + $0x138] sm:$0xf0]  ;;  %v1414_v15 = vld [vmem:[#allocation7 + $0xd0] sm:$0xf] }
 0x1f8   :  { %812 = vmatpush.bf16.msrb.mxu1 %v1547_v33  ;;  %v1459_v14 = vor.u32 %v1731_v10, %v1456_v12  ;;  %v1804_v12 = vld [vmem:[%s2133_s4] ss:$0 sm:$0xff] }
 0x1f9   :  { %306 = vmatmul.bf16.vlgmr.msrb.gmra.mxu2 %v297_v17  ;;  %v1700_v17 = vld [vmem:[#allocation7 + $0x1c] sm:$0xf0] }
 0x1fa   :  { %v1303_v19 = vor.u32 %v1700_v17, %v1302_v16  ;;  %v1726_v16 = vld [vmem:[#allocation7 + $0xec] sm:$0xf0]  ;;  %v1722_v17 = vld [vmem:[#allocation7 + $0xd4] sm:$0xf] }
 0x1fb   :  { %780 = vmatpush.bf16.msra.mxu2 %v1311_v24  ;;  %793 = vmatpush.bf16.msra.mxu3 %v1315_v28  ;;  %v1415_v18 = vor.u32 %v1726_v16, %v1414_v15  ;;  %v1423_v24 = vor.u32 %v1727_v21, %v1422_v20  ;;  %v1805_v15 = vld [vmem:[%s2134_s5] ss:$0 sm:$0xff]  ;;  %v1775_v20 = vld [vmem:[#allocation10 + $0x78] sm:$0xff] }
 0x1fc   :  { %754 = vmatpush.bf16.msra.mxu0 %v1303_v19  ;;  %813 = vmatpush.bf16.msrb.mxu1 %v1515_v47  ;;  %v1416_v19 = vld [vmem:[#allocation7 + $0xf0] sm:$0xf0]  ;;  %v1774_v21 = vld [vmem:[#allocation10 + $0x70] sm:$0xff] }
 0x1fd   :  { %v1419_v23 = vor.u32 %v1722_v17, %v1416_v19  ;;  %v1352_v47 = vld [vmem:[#allocation7 + $0x70] sm:$0xf0]  ;;  %v1767_v19 = vld [vmem:[#allocation10 + $0x38] sm:$0xff] }
 0x1ff   :  { %825 = vmatpush.bf16.msrb.mxu2 %v1551_v37  ;;  %838 = vmatpush.bf16.msrb.mxu3 %v1555_v41  ;;  %v1719_v37 = vld [vmem:[#allocation7 + $0xb4] sm:$0xf0]  ;;  %v1392_v41 = vld [vmem:[#allocation7 + $0xb8] sm:$0xf0] }
 0x200   :  { %799 = vmatpush.bf16.msrb.mxu0 %v1543_v32  ;;  %814 = vmatpush.bf16.msrb.mxu1 %v1483_v60  ;;  %v1384_v32 = vld [vmem:[#allocation7 + $0xb0] sm:$0xf0]  ;;  %v1391_v40 = vor.u32 %v1719_v37, %v1390_v36  ;;  %v1395_v44 = vor.u32 %v1715_v38, %v1392_v41  ;;  %v1363_v60 = vor.u32 %v1707_v50, %v1360_v53  ;;  %v2095_v36 = vld [vmem:[#allocation8] sm:$0xff]  ;;  %v1762_v37 = vld [vmem:[#allocation10 + $0x10] sm:$0xff] }
 0x201   :  { %v1387_v35 = vor.u32 %v1714_v31, %v1384_v32  ;;  %v1789_v31 = vld [vmem:[#allocation10 + $0xe8] sm:$0xff]  ;;  %v1763_v32 = vld [vmem:[#allocation10 + $0x18] sm:$0xff]  ;;  %v1770_v38 = vld [vmem:[#allocation10 + $0x50] sm:$0xff]  ;;  %v414_v57 = vperm.slane %v2095_v36, 3 }
 0x202   :  { %v1779_v41 = vld [vmem:[#allocation10 + $0x98] sm:$0xff]  ;;  %v1778_v50 = vld [vmem:[#allocation10 + $0x90] sm:$0xff] }
 0x203   :  { %826 = vmatpush.bf16.msrb.mxu2 %v1519_v51  ;;  %839 = vmatpush.bf16.msrb.mxu3 %v1523_v52  ;;  %v1355_v52 = vor.u32 %v1706_v46, %v1352_v47 }
 0x204   :  { %800 = vmatpush.bf16.msrb.mxu0 %v1511_v43  ;;  %815 = vmatpush.bf16.msrb.mxu1 %v1451_v8  ;;  %v1350_v43 = vld [vmem:[#allocation7 + $0x50] sm:$0xf] }
 0x205   :  { %v1351_v51 = vor.u32 %v1710_v45, %v1350_v43  ;;  %v1787_v43 = vld [vmem:[#allocation10 + $0xd8] sm:$0xff]  ;;  %v1769_v45 = vld [vmem:[#allocation10 + $0x48] sm:$0xff] }
 0x207   :  { %827 = vmatpush.bf16.msrb.mxu2 %v1487_v61  ;;  %840 = vmatpush.bf16.msrb.mxu3 %v1491_v0  ;;  %v1326_v61 = vld [vmem:[#allocation7 + $0x18] sm:$0xf]  ;;  %v1328_v0 = vld [vmem:[#allocation7 + $0x38] sm:$0xf0] }
 0x208   :  { %801 = vmatpush.bf16.msrb.mxu0 %v1479_v56  ;;  %816 = vmatpush.bf16.msrb.mxu1 %v1419_v23  ;;  %v1702_v56 = vld [vmem:[#allocation7 + $0x2c] sm:$0xf0]  ;;  %v1331_v6 = vor.u32 %v1699_v63, %v1328_v0  ;;  %v1791_v23 = vld [vmem:[#allocation10 + $0xf8] sm:$0xff] }
 0x209   :  { %v1319_v1 = vor.u32 %v1702_v56, %v1318_v54  ;;  %v1760_v54 = vld [vmem:[#allocation10] sm:$0xff]  ;;  %v413_v56 = vperm.slane %v2095_v36, 2 }
 0x20b   :  { %828 = vmatpush.bf16.msrb.mxu2 %v1455_v13  ;;  %841 = vmatpush.bf16.msrb.mxu3 %v1459_v14 }
 0x20c   :  { %802 = vmatpush.bf16.msrb.mxu0 %v1447_v4  ;;  %817 = vmatpush.bf16.msrb.mxu1 %v1387_v35  ;;  %v1327_v4 = vor.u32 %v1703_v62, %v1326_v61  ;;  %v1788_v35 = vld [vmem:[#allocation10 + $0xe0] sm:$0xff] }
 0x20f   :  { %829 = vmatpush.bf16.msrb.mxu2 %v1423_v24  ;;  %842 = vmatpush.bf16.msrb.mxu3 %v1427_v29  ;;  %v1765_v24 = vld [vmem:[#allocation10 + $0x28] sm:$0xff]  ;;  %v1772_v29 = vld [vmem:[#allocation10 + $0x60] sm:$0xff] }
 0x210   :  { %803 = vmatpush.bf16.msrb.mxu0 %v1415_v18  ;;  %818 = vmatpush.bf16.msrb.mxu1 %v1355_v52 }
 0x213   :  { %830 = vmatpush.bf16.msrb.mxu2 %v1391_v40  ;;  %843 = vmatpush.bf16.msrb.mxu3 %v1395_v44  ;;  %v412_v40 = vperm.slane %v2095_v36, 1  ;;  %v1761_v44 = vld [vmem:[#allocation10 + $0x8] sm:$0xff] }
 0x214   :  { %804 = vmatpush.bf16.msrb.mxu0 %v1383_v34  ;;  %819 = vmatpush.bf16.msrb.mxu1 %v1323_v2  ;;  %v1780_v34 = vld [vmem:[#allocation10 + $0xa0] sm:$0xff] }
 0x215   :  { %v1776_v2 = vld [vmem:[#allocation10 + $0x80] sm:$0xff] }
 0x217   :  { %831 = vmatpush.bf16.msrb.mxu2 %v1359_v55  ;;  %844 = vmatpush.bf16.msrb.mxu3 %v1363_v60  ;;  %v1768_v55 = vld [vmem:[#allocation10 + $0x40] sm:$0xff] }
 0x218   :  { %805 = vmatpush.bf16.msrb.mxu0 %v1351_v51  ;;  %v1786_v51 = vld [vmem:[#allocation10 + $0xd0] sm:$0xff] }
 0x21b   :  { %832 = vmatpush.bf16.msrb.mxu2 %v1327_v4  ;;  %845 = vmatpush.bf16.msrb.mxu3 %v1331_v6 }
 0x21c   :  { %806 = vmatpush.bf16.msrb.mxu0 %v1319_v1 }
 0x276   :  { %v320_v3 = vpop.f32.mrf.mxu3 }
 0x27c   :  { %v307_v22 = vpop.f32.mrf.mxu2 }
 0x27d   :  { %v321_v28 = vadd.f32 %v320_v3, %v307_v22  ;;  %v1783_v22 = vld [vmem:[#allocation10 + $0xb8] sm:$0xff] }
 0x27e   :  { %v322_v33 = vpop.f32.mrf.mxu3 }
 0x27f   :  { %v324_v39 = vadd.f32 1e-05, %v321_v28  ;;  %v1764_v28 = vld [vmem:[#allocation10 + $0x20] sm:$0xff]  ;;  %v1771_v33 = vld [vmem:[#allocation10 + $0x58] sm:$0xff] }
 0x281   :  { %1809 = vrsqrt.f32 %v324_v39  ;;  %vm331_vm4 = vweird.f32 %v324_v39 }
 0x284   :  { %v309_v59 = vpop.f32.mrf.mxu2 }
 0x285   :  { %v1785_v59 = vld [vmem:[#allocation10 + $0xc8] sm:$0xff] }
 0x287   :  { %v1810_v3 = vpop.eup %1809 }
 0x288   :  { %v326_v5 = vmul.f32 %v1810_v3, %v324_v39  ;;  %vm332_vm3 = vweird.f32 %v1810_v3  ;;  %v411_v39 = vperm.slane %v2095_v36, 0 }
 0x289   :  { %vm333_vm5 = vmor %vm331_vm4, %vm332_vm3 }
 0x28a   :  { %v327_v7 = vmul.f32 %v1810_v3, %v326_v5 }
 0x28c   :  { %v328_v8 = vmul.f32 0.5, %v327_v7 }
 0x28e   :  { %v329_v9 = vsub.f32 1.5, %v328_v8 }
 0x290   :  { %v330_v10 = vmul.f32 %v1810_v3, %v329_v9 }
 0x292   :  { %v334_v13 = vsel %vm333_vm5, %v1810_v3, %v330_v10  ;;  %v1784_v3 = vld [vmem:[#allocation10 + $0xc0] sm:$0xff] }
 0x293   :  { %v335_v14 = vmul.f32 %v334_v13, %v2084_v11  ;;  %v1766_v11 = vld [vmem:[#allocation10 + $0x30] sm:$0xff] }
 0x295   :  { %v339_v16 = vmul.f32 %v1804_v12, %v335_v14 }
 0x297   :  { %v343_v17 = vadd.f32 %v1805_v15, %v339_v16 }
 0x299   :  { %v344_v18 = vpack.c.bf16 %v343_v17, %v343_v17 }
 0x29b   :  { %755 = vmatmul.bf16.vlgmr.msra.gmra.mxu0 %v344_v18  ;;  %768 = vmatmul.bf16.vlgmr.msra.gmra.mxu1 %v344_v18 }
 0x29c   :  { %781 = vmatmul.bf16.vlgmr.msra.gmra.mxu2 %v344_v18  ;;  %794 = vmatmul.bf16.vlgmr.msra.gmra.mxu3 %v344_v18 }
 0x29d   :  { %1195 = vmatpush.bf16.msra.mxu0 %v1767_v19  ;;  %1208 = vmatpush.bf16.msra.mxu1 %v1775_v20 }
 0x29e   :  { %1221 = vmatpush.bf16.msra.mxu2 %v1783_v22  ;;  %1234 = vmatpush.bf16.msra.mxu3 %v1791_v23 }
 0x2a1   :  { %1196 = vmatpush.bf16.msra.mxu0 %v1766_v11  ;;  %1209 = vmatpush.bf16.msra.mxu1 %v1774_v21 }
 0x2a2   :  { %1222 = vmatpush.bf16.msra.mxu2 %v1782_v26  ;;  %1235 = vmatpush.bf16.msra.mxu3 %v1790_v27  ;;  %v415_v27 = vperm.slane %v2095_v36, 4 }
 0x2a5   :  { %1197 = vmatpush.bf16.msra.mxu0 %v1765_v24  ;;  %1210 = vmatpush.bf16.msra.mxu1 %v1773_v25 }
 0x2a6   :  { %1223 = vmatpush.bf16.msra.mxu2 %v1781_v30  ;;  %1236 = vmatpush.bf16.msra.mxu3 %v1789_v31  ;;  %v417_v30 = vperm.slane %v2095_v36, 6 }
 0x2a9   :  { %1198 = vmatpush.bf16.msra.mxu0 %v1764_v28  ;;  %1211 = vmatpush.bf16.msra.mxu1 %v1772_v29  ;;  %v416_v28 = vperm.slane %v2095_v36, 5 }
 0x2aa   :  { %1224 = vmatpush.bf16.msra.mxu2 %v1780_v34  ;;  %1237 = vmatpush.bf16.msra.mxu3 %v1788_v35 }
 0x2ab   :  { %807 = vmatmul.bf16.vlgmr.msrb.gmra.mxu0 %v344_v18  ;;  %820 = vmatmul.bf16.vlgmr.msrb.gmra.mxu1 %v344_v18 }
 0x2ac   :  { %833 = vmatmul.bf16.vlgmr.msrb.gmra.mxu2 %v344_v18  ;;  %846 = vmatmul.bf16.vlgmr.msrb.gmra.mxu3 %v344_v18 }
 0x2ad   :  { %1199 = vmatpush.bf16.msra.mxu0 %v1763_v32  ;;  %1212 = vmatpush.bf16.msra.mxu1 %v1771_v33 }
 0x2ae   :  { %1225 = vmatpush.bf16.msra.mxu2 %v1779_v41  ;;  %1238 = vmatpush.bf16.msra.mxu3 %v1787_v43 }
 0x2b1   :  { %1200 = vmatpush.bf16.msra.mxu0 %v1762_v37  ;;  %1213 = vmatpush.bf16.msra.mxu1 %v1770_v38  ;;  %v418_v38 = vperm.slane %v2095_v36, 7 }
 0x2b2   :  { %1226 = vmatpush.bf16.msra.mxu2 %v1778_v50  ;;  %1239 = vmatpush.bf16.msra.mxu3 %v1786_v51 }
 0x2b5   :  { %1201 = vmatpush.bf16.msra.mxu0 %v1761_v44  ;;  %1214 = vmatpush.bf16.msra.mxu1 %v1769_v45 }
 0x2b6   :  { %1227 = vmatpush.bf16.msra.mxu2 %v1777_v58  ;;  %1240 = vmatpush.bf16.msra.mxu3 %v1785_v59 }
 0x2b9   :  { %1202 = vmatpush.bf16.msra.mxu0 %v1760_v54  ;;  %1215 = vmatpush.bf16.msra.mxu1 %v1768_v55 }
 0x2ba   :  { %1228 = vmatpush.bf16.msra.mxu2 %v1776_v2  ;;  %1241 = vmatpush.bf16.msra.mxu3 %v1784_v3 }
 0x318   :  { %v756_v46 = vpop.f32.mrf.mxu0  ;;  %v769_v47 = vpop.f32.mrf.mxu1 }
 0x319   :  { %v757_v48 = vadd.f32 %v756_v46, %v411_v39  ;;  %v770_v49 = vadd.f32 %v769_v47, %v412_v40 }
 0x31b   :  { %v1556_v52 = vmul.f32 -1.442695, %v757_v48  ;;  %v1557_v53 = vmul.f32 -1.442695, %v770_v49 }
 0x31d   :  { %1811 = vpow2.f32 %v1556_v52 }
 0x31e   :  { %1813 = vpow2.f32 %v1557_v53 }
 0x31f   :  { %v782_v60 = vpop.f32.mrf.mxu2  ;;  %v795_v61 = vpop.f32.mrf.mxu3 }
 0x320   :  { %v783_v62 = vadd.f32 %v782_v60, %v413_v56  ;;  %v796_v63 = vadd.f32 %v795_v61, %v414_v57  ;;  %v758_v0 = vpop.f32.mrf.mxu0  ;;  %v771_v1 = vpop.f32.mrf.mxu1 }
 0x322   :  { %v1558_v4 = vmul.f32 -1.442695, %v783_v62  ;;  %v1559_v5 = vmul.f32 -1.442695, %v796_v63 }
 0x323   :  { %v1812_v6 = vpop.eup %1811 }
 0x324   :  { %v1814_v7 = vpop.eup %1813  ;;  %v863_v8 = vadd.f32 1.0, %v1812_v6  ;;  %1815 = vpow2.f32 %v1558_v4 }
 0x325   :  { %v864_v9 = vadd.f32 1.0, %v1814_v7  ;;  %1817 = vpow2.f32 %v1559_v5 }
 0x326   :  { %1819 = vrcp.f32 %v863_v8  ;;  %v876_v23 = vand.u32 2147483647, %v863_v8  ;;  %v878_v24 = vand.u32 2147483648, %v863_v8  ;;  %vm872_vm7 = vweird.f32 %v863_v8 }
 0x327   :  { %1821 = vrcp.f32 %v864_v9  ;;  %v784_v10 = vpop.f32.mrf.mxu2  ;;  %v797_v12 = vpop.f32.mrf.mxu3  ;;  %v891_v34 = vand.u32 2147483647, %v864_v9  ;;  %v893_v35 = vand.u32 2147483648, %v864_v9  ;;  %vm887_vm10 = vweird.f32 %v864_v9 }
 0x328   :  { %v808_v13 = vpop.f32.mrf.mxu0  ;;  %v821_v14 = vpop.f32.mrf.mxu1  ;;  %vm877_vm9 = vcmp.eq.f32.partialorder %v876_v23, 8.507059e+37  ;;  %v879_v41 = vor.u32 1.1754944e-38, %v878_v24 }
 0x329   :  { %v809_v44 = vadd.f32 %v808_v13, %v415_v27  ;;  %v822_v45 = vadd.f32 %v821_v14, %v416_v28  ;;  %vm892_vm13 = vcmp.eq.f32.partialorder %v891_v34, 8.507059e+37  ;;  %v894_v49 = vor.u32 1.1754944e-38, %v893_v35 }
 0x32a   :  { %v1816_v15 = vpop.eup %1815 }
 0x32b   :  { %v1818_v16 = vpop.eup %1817  ;;  %v2101_v17 = vadd.f32 1.0, %v1816_v15 }
 0x32c   :  { %v1820_v18 = vpop.eup %1819  ;;  %v2103_v19 = vadd.f32 1.0, %v1818_v16 }
 0x32d   :  { %v1822_v20 = vpop.eup %1821  ;;  %1823 = vrcp.f32 %v2101_v17  ;;  %v868_v11 = vmul.f32 %v1820_v18, %v863_v8  ;;  %vm873_vm6 = vweird.f32 %v1820_v18  ;;  %v906_v53 = vand.u32 2147483647, %v2101_v17 }
 0x32e   :  { %1825 = vrcp.f32 %v2103_v19  ;;  %v883_v21 = vmul.f32 %v1822_v20, %v864_v9  ;;  %vm888_vm8 = vweird.f32 %v1822_v20  ;;  %vm874_vm11 = vmor %vm872_vm7, %vm873_vm6  ;;  %v908_v56 = vand.u32 2147483648, %v2101_v17 }
 0x32f   :  { %v869_v22 = vsub.f32 1.0, %v868_v11  ;;  %v834_v25 = vpop.f32.mrf.mxu2  ;;  %v2107_v26 = vpop.f32.mrf.mxu3  ;;  %vm889_vm12 = vmor %vm887_vm10, %vm888_vm8  ;;  %v923_v62 = vand.u32 2147483648, %v2103_v19  ;;  %v921_v1 = vand.u32 2147483647, %v2103_v19  ;;  %vm902_vm0 = vweird.f32 %v2101_v17 }
 0x330   :  { %v884_v29 = vsub.f32 1.0, %v883_v21  ;;  %v810_v31 = vpop.f32.mrf.mxu0  ;;  %v823_v32 = vpop.f32.mrf.mxu1  ;;  %v909_v4 = vor.u32 1.1754944e-38, %v908_v56  ;;  %vm917_vm2 = vweird.f32 %v2103_v19  ;;  %v835_v6 = vadd.f32 %v834_v25, %v417_v30 }
 0x331   :  { %v870_v33 = vmul.f32 %v1820_v18, %v869_v22  ;;  %vm907_vm3 = vcmp.eq.f32.partialorder %v906_v53, 8.507059e+37  ;;  %v924_v8 = vor.u32 1.1754944e-38, %v923_v62  ;;  %v848_v10 = vadd.f32 %v2107_v26, %v418_v38 }
 0x332   :  { %v885_v37 = vmul.f32 %v1822_v20, %v884_v29  ;;  %vm922_vm5 = vcmp.eq.f32.partialorder %v921_v1, 8.507059e+37 }
 0x333   :  { %v1824_v39 = vpop.eup %1823  ;;  %v871_v40 = vadd.f32 %v1820_v18, %v870_v33 }
 0x334   :  { %v1826_v43 = vpop.eup %1825  ;;  %v886_v46 = vadd.f32 %v1822_v20, %v885_v37  ;;  %v898_v47 = vmul.f32 %v1824_v39, %v2101_v17  ;;  %vm903_vm14 = vweird.f32 %v1824_v39 }
 0x335   :  { %v875_v48 = vsel %vm874_vm11, %v1820_v18, %v871_v40  ;;  %v913_v50 = vmul.f32 %v1826_v43, %v2103_v19  ;;  %vm918_vm15 = vweird.f32 %v1826_v43  ;;  %vm904_vm1 = vmor %vm902_vm0, %vm903_vm14 }
 0x336   :  { %v880_v51 = vsel %vm877_vm9, %v879_v41, %v875_v48  ;;  %v890_v36 = vsel %vm889_vm12, %v1822_v20, %v886_v46  ;;  %v899_v52 = vsub.f32 1.0, %v898_v47  ;;  %vm919_vm4 = vmor %vm917_vm2, %vm918_vm15  ;;  %v1806_v20 = vld [vmem:[%s2138_s9] ss:$0 sm:$0xff] }
 0x337   :  { %v927_v54 = vmul.f32 %v880_v51, %v809_v44  ;;  %v895_v55 = vsel %vm892_vm13, %v894_v49, %v890_v36  ;;  %v914_v57 = vsub.f32 1.0, %v913_v50  ;;  %v836_v58 = vpop.f32.mrf.mxu2  ;;  %v849_v59 = vpop.f32.mrf.mxu3 }
 0x338   :  { %v928_v60 = vmul.f32 %v895_v55, %v822_v45  ;;  %v900_v61 = vmul.f32 %v1824_v39, %v899_v52 }
 0x339   :  { %v931_v63 = vpack.c.bf16 %v927_v54, %v927_v54  ;;  %v915_v0 = vmul.f32 %v1826_v43, %v914_v57 }
 0x33a   :  { %v932_v2 = vpack.c.bf16 %v928_v60, %v928_v60  ;;  %v901_v3 = vadd.f32 %v1824_v39, %v900_v61 }
 0x33b   :  { %v916_v5 = vadd.f32 %v1826_v43, %v915_v0  ;;  %1203 = vmatmul.bf16.vlgmr.msra.gmra.mxu0 %v931_v63 }
 0x33c   :  { %v905_v7 = vsel %vm904_vm1, %v1824_v39, %v901_v3  ;;  %1216 = vmatmul.bf16.vlgmr.msra.gmra.mxu1 %v932_v2 }
 0x33d   :  { %v910_v9 = vsel %vm907_vm3, %v909_v4, %v905_v7  ;;  %v920_v12 = vsel %vm919_vm4, %v1826_v43, %v916_v5 }
 0x33e   :  { %v929_v13 = vmul.f32 %v910_v9, %v835_v6  ;;  %v925_v14 = vsel %vm922_vm5, %v924_v8, %v920_v12 }
 0x33f   :  { %v930_v15 = vmul.f32 %v925_v14, %v848_v10 }
 0x340   :  { %v933_v16 = vpack.c.bf16 %v929_v13, %v929_v13 }
 0x341   :  { %v934_v17 = vpack.c.bf16 %v930_v15, %v930_v15 }
 0x342   :  { %1229 = vmatmul.bf16.vlgmr.msra.gmra.mxu2 %v933_v16 }
 0x343   :  { %1242 = vmatmul.bf16.vlgmr.msra.gmra.mxu3 %v934_v17 }
 0x3b8   :  { %v1204_v18 = vpop.f32.mrf.mxu0 }
 0x3b9   :  { %v1217_v19 = vpop.f32.mrf.mxu1  ;;  %v1205_v11 = vadd.f32 %v1806_v20, %v1204_v18 }
 0x3bb   :  { %v1218_v23 = vadd.f32 %v1217_v19, %v1205_v11 }
 0x3c0   :  { %v1206_v21 = vpop.f32.mrf.mxu0 }
 0x3c1   :  { %v1219_v22 = vpop.f32.mrf.mxu1 }
 0x3c5   :  { %v1230_v24 = vpop.f32.mrf.mxu2 }
 0x3c6   :  { %v1231_v25 = vadd.f32 %v1230_v24, %v1218_v23  ;;  %v1243_v26 = vpop.f32.mrf.mxu3 }
 0x3c8   :  { %v1244_v27 = vadd.f32 %v1243_v26, %v1231_v25 }
 0x3ca   :  { %v1247_v28 = vadd.f32 %v1244_v27, %v2078_v42 }
 0x3cc   :  { %1248 = vst [vmem:[#allocation11] sm:$0xff] %v1247_v28 }
 0x3cd   :  { %v1232_v29 = vpop.f32.mrf.mxu2  ;;  %1259 = dma.vmem_to_hbm [thread:$0]  %s1255_s24, 128, %s1257_s26, [#allocation4]  }
 0x3ce   :  { %v1245_v30 = vpop.f32.mrf.mxu3 }
 0x3cf   :  { %1977 = dma.done.wait [#allocation4], 128  }
 0x3d0   :  { %1978 = vsyncadd [#allocation4], 4294967168 }
 0x3d1   :  { %1264 = vsyncpa [#allocation3], 1 }
 0x3d2   :  { %1265 = vsyncpa [#allocation6], 1 }
 0x3d3   :  { %1266 = vsyncpa [#allocation9], 1 }
 0x3d4   :  { %1267 = vsyncpa [#allocation4], 1 }

</bundles_post_ra>
